<compile_context>
chip_gen: v7x
topology: tpu7x:2x2x1
jax: 0.10.0
libtpu: 0.0.40
codegen_flags: <defaults>
</compile_context>

<pallas_src>
import math

import jax
import jax.numpy as jnp
from jax import lax
from jax.experimental import pallas as pl
from jax.experimental.pallas import tpu as pltpu


INPUT_DIM = 2
HIDDEN_DIM = 128
OUTPUT_DIM = 1


def _round_up(n, m):
    return ((n + m - 1) // m) * m


def _make_kernel(use_bf16):
    compute_dtype = jnp.bfloat16 if use_bf16 else jnp.float32

    def kernel(x_ref, w1_ref, b1_ref, w2_ref, b2_ref, w3_ref, b3_ref,
               w4_ref, b4_ref, o_ref):
        x = x_ref[...]                                     # (bm, 2) f32
        w1 = w1_ref[...]                                   # (2, 128) f32

        # Layer 1: K=2 contraction as two lane-broadcast FMAs on the VPU
        # (avoids an MXU push/pop for a 2-wide contraction). Math in f32.
        h = x[:, 0:1] * w1[0:1, :] + x[:, 1:2] * w1[1:2, :] + b1_ref[...]
        h = jnp.maximum(h, 0.0).astype(compute_dtype)      # (bm, 128)

        # Layers 2/3: 128x128 MXU matmuls. With use_bf16 the epilogue
        # (bias + ReLU) stays in bf16, halving VALU / load-store traffic on
        # the (bm,128) intermediates (bf16 VPU is native on v6e/v7x).
        h = jnp.dot(h, w2_ref[...], preferred_element_type=compute_dtype)
        h = jnp.maximum(h + b2_ref[...], 0).astype(compute_dtype)

        h = jnp.dot(h, w3_ref[...], preferred_element_type=compute_dtype)
        h = jnp.maximum(h + b3_ref[...], 0).astype(compute_dtype)

        # Layer 4 (output head): (bm,128) x (128,1) -> (bm,1), f32 accumulate.
        out = jnp.dot(h, w4_ref[...], preferred_element_type=jnp.float32)
        o_ref[...] = (out + b4_ref[...]).astype(o_ref.dtype)

    return kernel


def nnp_forward(x, params, *, block_m=2048, use_bf16=True):
    """Fused MLP forward. x: (B, 2) float32 -> (B, 1) float32.

    block_m: batch tile (rounded to a multiple of 128); 2048 amortizes the
      per-grid-step overhead for large batches while keeping VMEM tiny.
    use_bf16: bf16 MXU inputs + bf16 epilogue (recommended on v6e/v7x).
      Set False for the exact f32 path (and on v5e, whose VPU has no bf16).
    """
    w1, b1, w2, b2, w3, b3, w4, b4 = params
    B = x.shape[0]
    assert x.shape[1] == INPUT_DIM

    if use_bf16:
        w2 = w2.astype(jnp.bfloat16)
        b2 = b2.astype(jnp.bfloat16)
        w3 = w3.astype(jnp.bfloat16)
        b3 = b3.astype(jnp.bfloat16)
        w4 = w4.astype(jnp.bfloat16)
        # b4 stays f32: the final matmul accumulates/adds in f32.

    # Batch tile: multiple of 128; pad the batch with zero rows (sliced off
    # afterwards) so any batch size works.
    block_m = _round_up(max(block_m, 128), 128)
    bm = min(block_m, _round_up(B, 128))
    # v7x: the parallel grid axis is sharded across 2 TensorCores -- make sure
    # there are at least 2 blocks whenever the batch allows it.
    if B > 128 and pl.cdiv(B, bm) < 2:
        bm = _round_up(pl.cdiv(B, 2), 128)
    num_blocks = pl.cdiv(B, bm)
    b_pad = num_blocks * bm
    if b_pad != B:
        x = jnp.pad(x, ((0, b_pad - B), (0, 0)))

    def full_spec(arr):
        nd = arr.ndim
        # Constant index map => DMA'd once, VMEM-resident across grid steps.
        return pl.BlockSpec(arr.shape, lambda i, _nd=nd: (0,) * _nd)

    weight_bytes = sum(int(a.size) * a.dtype.itemsize
                       for a in (w1, b1, w2, b2, w3, b3, w4, b4))
    cost = pl.CostEstimate(
        flops=2 * b_pad * HIDDEN_DIM * (INPUT_DIM + 2 * HIDDEN_DIM + OUTPUT_DIM),
        transcendentals=0,
        bytes_accessed=b_pad * (INPUT_DIM + OUTPUT_DIM) * 4 + weight_bytes,
    )

    out = pl.pallas_call(
        _make_kernel(use_bf16),
        out_shape=jax.ShapeDtypeStruct((b_pad, OUTPUT_DIM), jnp.float32),
        grid_spec=pltpu.PrefetchScalarGridSpec(
            num_scalar_prefetch=0,
            grid=(num_blocks,),
            in_specs=[
                pl.BlockSpec((bm, INPUT_DIM), lambda i: (i, 0)),  # x tile
                full_spec(w1), full_spec(b1),
                full_spec(w2), full_spec(b2),
                full_spec(w3), full_spec(b3),
                full_spec(w4), full_spec(b4),
            ],
            out_specs=pl.BlockSpec((bm, OUTPUT_DIM), lambda i: (i, 0)),
        ),
        compiler_params=pltpu.CompilerParams(
            dimension_semantics=("parallel",)),
        cost_estimate=cost,
    )(x, w1, b1, w2, b2, w3, b3, w4, b4)

    return out[:B]


def init_params(key):
    """Deterministic init mimicking torch.nn.Linear (uniform +/- 1/sqrt(fan_in)).

    Weights stored as (in_features, out_features); biases as (1, out_features)
    to keep everything 2-D for TPU layout.
    """
    dims = [(INPUT_DIM, HIDDEN_DIM),
            (HIDDEN_DIM, HIDDEN_DIM),
            (HIDDEN_DIM, HIDDEN_DIM),
            (HIDDEN_DIM, OUTPUT_DIM)]
    params = []
    for (fan_in, fan_out) in dims:
        key, kw, kb = jax.random.split(key, 3)
        bound = 1.0 / math.sqrt(fan_in)
        w = jax.random.uniform(kw, (fan_in, fan_out), jnp.float32, -bound, bound)
        b = jax.random.uniform(kb, (1, fan_out), jnp.float32, -bound, bound)
        params += [w, b]
    return tuple(params)


def nnp_reference(x, params):
    # Full-precision reference (HIGHEST precision so the baseline is true f32).
    w1, b1, w2, b2, w3, b3, w4, b4 = params
    hp = lax.Precision.HIGHEST
    h = jnp.maximum(jnp.dot(x, w1, precision=hp) + b1, 0.0)
    h = jnp.maximum(jnp.dot(h, w2, precision=hp) + b2, 0.0)
    h = jnp.maximum(jnp.dot(h, w3, precision=hp) + b3, 0.0)
    return jnp.dot(h, w4, precision=hp) + b4


if __name__ == "__main__":
    key = jax.random.PRNGKey(0)
    key, kx = jax.random.split(key)
    params = init_params(key)

    # Small demo batch, matching the PyTorch module's (batch, 2) inputs.
    batch = 8
    x = jax.random.normal(kx, (batch, INPUT_DIM), jnp.float32)
    ref = nnp_reference(x, params)

    # Exact (f32) path.
    out_f32 = jax.block_until_ready(nnp_forward(x, params, use_bf16=False))
    assert out_f32.shape == (batch, OUTPUT_DIM)
    assert jnp.allclose(out_f32, ref, atol=1e-4, rtol=1e-4)

    # Fast path: bf16 matmul inputs + bf16 epilogue (looser tolerance).
    out_bf16 = jax.block_until_ready(nnp_forward(x, params, use_bf16=True))
    assert jnp.allclose(out_bf16, ref, atol=1e-1, rtol=1e-1)

    # Non-tile-multiple batch exercises padding + a multi-block grid
    # (bm is auto-capped so the grid has >= 2 blocks).
    key, kx2 = jax.random.split(key)
    x_odd = jax.random.normal(kx2, (300, INPUT_DIM), jnp.float32)
    out_odd = jax.block_until_ready(nnp_forward(x_odd, params, use_bf16=True))
    ref_odd = nnp_reference(x_odd, params)
    assert out_odd.shape == (300, OUTPUT_DIM)
    assert jnp.allclose(out_odd, ref_odd, atol=1e-1, rtol=1e-1)

    print("KERNEL_OK")
</pallas_src>

<mosaic_0001>
module attributes {stable_mosaic.version = 11 : i64} {
  func.func @kernel(%arg0: i32, %arg1: memref<128x2xf32, #tpu.memory_space<vmem>>, %arg2: memref<2x128xf32, #tpu.memory_space<vmem>>, %arg3: memref<1x128xf32, #tpu.memory_space<vmem>>, %arg4: memref<128x128xf32, #tpu.memory_space<vmem>>, %arg5: memref<1x128xf32, #tpu.memory_space<vmem>>, %arg6: memref<128x128xf32, #tpu.memory_space<vmem>>, %arg7: memref<1x128xf32, #tpu.memory_space<vmem>>, %arg8: memref<128x1xf32, #tpu.memory_space<vmem>>, %arg9: memref<1x1xf32, #tpu.memory_space<vmem>>, %arg10: memref<128x1xf32, #tpu.memory_space<vmem>>) attributes {dimension_semantics = [#tpu.dimension_semantics<parallel>], iteration_bounds = array<i64: 1>, scalar_prefetch = 0 : i64, scratch_operands = 0 : i64, tpu.core_type = #tpu.core_type<tc>, window_params = [{transform_indices = @transform_0, window_bounds = array<i64: 128, 2>}, {pipeline_mode = #tpu.pipeline_mode<synchronous>, transform_indices = @transform_1, window_bounds = array<i64: 2, 128>}, {pipeline_mode = #tpu.pipeline_mode<synchronous>, transform_indices = @transform_2, window_bounds = array<i64: 1, 128>}, {pipeline_mode = #tpu.pipeline_mode<synchronous>, transform_indices = @transform_3, window_bounds = array<i64: 128, 128>}, {pipeline_mode = #tpu.pipeline_mode<synchronous>, transform_indices = @transform_4, window_bounds = array<i64: 1, 128>}, {pipeline_mode = #tpu.pipeline_mode<synchronous>, transform_indices = @transform_5, window_bounds = array<i64: 128, 128>}, {pipeline_mode = #tpu.pipeline_mode<synchronous>, transform_indices = @transform_6, window_bounds = array<i64: 1, 128>}, {pipeline_mode = #tpu.pipeline_mode<synchronous>, transform_indices = @transform_7, window_bounds = array<i64: 128, 1>}, {pipeline_mode = #tpu.pipeline_mode<synchronous>, transform_indices = @transform_8, window_bounds = array<i64: 1, 1>}, {transform_indices = @transform_9, window_bounds = array<i64: 128, 1>}]} {
    %c0 = arith.constant 0 : index
    %c0_0 = arith.constant 0 : index
    %0 = vector.load %arg1[%c0, %c0_0] : memref<128x2xf32, #tpu.memory_space<vmem>>, vector<128x2xf32>
    %c0_1 = arith.constant 0 : index
    %c0_2 = arith.constant 0 : index
    %1 = vector.load %arg2[%c0_1, %c0_2] : memref<2x128xf32, #tpu.memory_space<vmem>>, vector<2x128xf32>
    %2 = vector.extract_strided_slice %0 {offsets = [0, 0], sizes = [128, 1], strides = [1, 1]} : vector<128x2xf32> to vector<128x1xf32>
    %3 = vector.extract_strided_slice %1 {offsets = [0, 0], sizes = [1, 128], strides = [1, 1]} : vector<2x128xf32> to vector<1x128xf32>
    %4 = vector.broadcast %2 : vector<128x1xf32> to vector<128x128xf32>
    %5 = vector.broadcast %3 : vector<1x128xf32> to vector<128x128xf32>
    %6 = arith.mulf %4, %5 : vector<128x128xf32>
    %7 = vector.extract_strided_slice %0 {offsets = [0, 1], sizes = [128, 1], strides = [1, 1]} : vector<128x2xf32> to vector<128x1xf32>
    %8 = vector.extract_strided_slice %1 {offsets = [1, 0], sizes = [1, 128], strides = [1, 1]} : vector<2x128xf32> to vector<1x128xf32>
    %9 = vector.broadcast %7 : vector<128x1xf32> to vector<128x128xf32>
    %10 = vector.broadcast %8 : vector<1x128xf32> to vector<128x128xf32>
    %11 = arith.mulf %9, %10 : vector<128x128xf32>
    %12 = arith.addf %6, %11 : vector<128x128xf32>
    %c0_3 = arith.constant 0 : index
    %c0_4 = arith.constant 0 : index
    %13 = vector.load %arg3[%c0_3, %c0_4] : memref<1x128xf32, #tpu.memory_space<vmem>>, vector<1x128xf32>
    %14 = vector.broadcast %13 : vector<1x128xf32> to vector<128x128xf32>
    %15 = arith.addf %12, %14 : vector<128x128xf32>
    %cst = arith.constant 0.000000e+00 : f32
    %16 = vector.broadcast %cst : f32 to vector<128x128xf32>
    %17 = arith.maximumf %15, %16 : vector<128x128xf32>
    %c0_5 = arith.constant 0 : index
    %c0_6 = arith.constant 0 : index
    %18 = vector.load %arg4[%c0_5, %c0_6] : memref<128x128xf32, #tpu.memory_space<vmem>>, vector<128x128xf32>
    %cst_7 = arith.constant dense<0.000000e+00> : vector<128x128xf32>
    %19 = tpu.matmul %17, %18, %cst_7 {dimension_numbers = #tpu.dot_dimension_numbers<[1], [0], [0], [1], [0, 0, 1, 1], [], []>} : vector<128x128xf32>, vector<128x128xf32>, vector<128x128xf32> -> vector<128x128xf32>
    %c0_8 = arith.constant 0 : index
    %c0_9 = arith.constant 0 : index
    %20 = vector.load %arg5[%c0_8, %c0_9] : memref<1x128xf32, #tpu.memory_space<vmem>>, vector<1x128xf32>
    %21 = vector.broadcast %20 : vector<1x128xf32> to vector<128x128xf32>
    %22 = arith.addf %19, %21 : vector<128x128xf32>
    %cst_10 = arith.constant 0.000000e+00 : f32
    %23 = vector.broadcast %cst_10 : f32 to vector<128x128xf32>
    %24 = arith.maximumf %22, %23 : vector<128x128xf32>
    %c0_11 = arith.constant 0 : index
    %c0_12 = arith.constant 0 : index
    %25 = vector.load %arg6[%c0_11, %c0_12] : memref<128x128xf32, #tpu.memory_space<vmem>>, vector<128x128xf32>
    %cst_13 = arith.constant dense<0.000000e+00> : vector<128x128xf32>
    %26 = tpu.matmul %24, %25, %cst_13 {dimension_numbers = #tpu.dot_dimension_numbers<[1], [0], [0], [1], [0, 0, 1, 1], [], []>} : vector<128x128xf32>, vector<128x128xf32>, vector<128x128xf32> -> vector<128x128xf32>
    %c0_14 = arith.constant 0 : index
    %c0_15 = arith.constant 0 : index
    %27 = vector.load %arg7[%c0_14, %c0_15] : memref<1x128xf32, #tpu.memory_space<vmem>>, vector<1x128xf32>
    %28 = vector.broadcast %27 : vector<1x128xf32> to vector<128x128xf32>
    %29 = arith.addf %26, %28 : vector<128x128xf32>
    %cst_16 = arith.constant 0.000000e+00 : f32
    %30 = vector.broadcast %cst_16 : f32 to vector<128x128xf32>
    %31 = arith.maximumf %29, %30 : vector<128x128xf32>
    %c0_17 = arith.constant 0 : index
    %c0_18 = arith.constant 0 : index
    %32 = vector.load %arg8[%c0_17, %c0_18] : memref<128x1xf32, #tpu.memory_space<vmem>>, vector<128x1xf32>
    %cst_19 = arith.constant dense<0.000000e+00> : vector<128x1xf32>
    %33 = tpu.matmul %31, %32, %cst_19 {dimension_numbers = #tpu.dot_dimension_numbers<[1], [0], [0], [1], [0, 0, 1, 1], [], []>} : vector<128x128xf32>, vector<128x1xf32>, vector<128x1xf32> -> vector<128x1xf32>
    %c0_20 = arith.constant 0 : index
    %c0_21 = arith.constant 0 : index
    %34 = vector.load %arg9[%c0_20, %c0_21] : memref<1x1xf32, #tpu.memory_space<vmem>>, vector<1x1xf32>
    %35 = vector.broadcast %34 : vector<1x1xf32> to vector<128x1xf32>
    %36 = arith.addf %33, %35 : vector<128x1xf32>
    %c0_22 = arith.constant 0 : index
    %c0_23 = arith.constant 0 : index
    %37 = vector.load %arg10[%c0_22, %c0_23] : memref<128x1xf32, #tpu.memory_space<vmem>>, vector<128x1xf32>
    tpu.vector_store %arg10[%c0_22, %c0_23], %36 {strides = array<i32>} : memref<128x1xf32, #tpu.memory_space<vmem>>, vector<128x1xf32>,
    return
  }
  func.func @transform_0(%arg0: i32) -> (i32, i32) {
    %c0_i32 = arith.constant 0 : i32
    %c0_i32_0 = arith.constant 0 : i32
    return %arg0, %c0_i32 : i32, i32
  }
  func.func @transform_1(%arg0: i32) -> (i32, i32) {
    %c0_i32 = arith.constant 0 : i32
    %c0_i32_0 = arith.constant 0 : i32
    %c0_i32_1 = arith.constant 0 : i32
    return %c0_i32, %c0_i32_0 : i32, i32
  }
  func.func @transform_2(%arg0: i32) -> (i32, i32) {
    %c0_i32 = arith.constant 0 : i32
    %c0_i32_0 = arith.constant 0 : i32
    %c0_i32_1 = arith.constant 0 : i32
    return %c0_i32, %c0_i32_0 : i32, i32
  }
  func.func @transform_3(%arg0: i32) -> (i32, i32) {
    %c0_i32 = arith.constant 0 : i32
    %c0_i32_0 = arith.constant 0 : i32
    %c0_i32_1 = arith.constant 0 : i32
    return %c0_i32, %c0_i32_0 : i32, i32
  }
  func.func @transform_4(%arg0: i32) -> (i32, i32) {
    %c0_i32 = arith.constant 0 : i32
    %c0_i32_0 = arith.constant 0 : i32
    %c0_i32_1 = arith.constant 0 : i32
    return %c0_i32, %c0_i32_0 : i32, i32
  }
  func.func @transform_5(%arg0: i32) -> (i32, i32) {
    %c0_i32 = arith.constant 0 : i32
    %c0_i32_0 = arith.constant 0 : i32
    %c0_i32_1 = arith.constant 0 : i32
    return %c0_i32, %c0_i32_0 : i32, i32
  }
  func.func @transform_6(%arg0: i32) -> (i32, i32) {
    %c0_i32 = arith.constant 0 : i32
    %c0_i32_0 = arith.constant 0 : i32
    %c0_i32_1 = arith.constant 0 : i32
    return %c0_i32, %c0_i32_0 : i32, i32
  }
  func.func @transform_7(%arg0: i32) -> (i32, i32) {
    %c0_i32 = arith.constant 0 : i32
    %c0_i32_0 = arith.constant 0 : i32
    %c0_i32_1 = arith.constant 0 : i32
    return %c0_i32, %c0_i32_0 : i32, i32
  }
  func.func @transform_8(%arg0: i32) -> (i32, i32) {
    %c0_i32 = arith.constant 0 : i32
    %c0_i32_0 = arith.constant 0 : i32
    %c0_i32_1 = arith.constant 0 : i32
    return %c0_i32, %c0_i32_0 : i32, i32
  }
  func.func @transform_9(%arg0: i32) -> (i32, i32) {
    %c0_i32 = arith.constant 0 : i32
    %c0_i32_0 = arith.constant 0 : i32
    return %arg0, %c0_i32 : i32, i32
  }
}

</mosaic_0001>

<bundles_post_ra>
// kernel: tpu_custom_call.1
= control target key start
LH: loop header
LB: loop body
LE: loop exit
PB: predicated region body
PF: predicated region fallthrough
CT: control target
= control target key end

     0   :  { %v1234_v0 = vmov 0   ;;  %v1235_v3 = vmov 1   ;;  %v131_v63 = vlaneseq  ;;  %vm826_vm0 = vcmask 7168   ;;  %s1629_s0 = inlined_call_operand.vmem [shape: f32[128,2], index: 0, kind: input, shape index: {}]   ;;  %s1630_s3 = inlined_call_operand.vmem [shape: f32[128,128], index: 3, kind: input, shape index: {}]   ;;  %s1631_s5 = inlined_call_operand.vmem [shape: f32[128,128], index: 5, kind: input, shape index: {}]   ;;  %s1632_s1 = inlined_call_operand.vmem [shape: f32[2,128], index: 1, kind: input, shape index: {}]   ;;  %s1633_s2 = inlined_call_operand.vmem [shape: f32[1,128], index: 2, kind: input, shape index: {}]   ;;  %s1634_s7 = inlined_call_operand.vmem [shape: f32[128,1], index: 7, kind: input, shape index: {}]   ;;  %s1635_s4 = inlined_call_operand.vmem [shape: f32[1,128], index: 4, kind: input, shape index: {}]   ;;  %s1636_s8 = inlined_call_operand.<no memory space> [shape: f32[1,1], index: 8, kind: input, shape index: {}]   ;;  %s1637_s6 = inlined_call_operand.vmem [shape: f32[1,128], index: 6, kind: input, shape index: {}]   ;;  %s1638_s9 = inlined_call_operand.vmem [shape: f32[128,1], index: 9, kind: output, shape index: {}]  }
   0x1   :  { %1231 = vset.pattern.permute.xlu1 %v1234_v0  ;;  %1229 = vset.pattern.permute.xlu0 %v1234_v0  ;;  %v35_v1 = vld [vmem:[%s1629_s0 + $0x8] sm:$0xff]  ;;  %v34_v2 = vld [vmem:[%s1629_s0] sm:$0xff]  ;;  %v292_v7 = vld [vmem:[%s1630_s3 + $0x10] sm:$0xff] }
   0x2   :  { %58 = vperm.xlu1 %1231, %v35_v1   ;;  %53 = vperm.xlu0 %1229, %v34_v2   ;;  %v290_v4 = vld [vmem:[%s1630_s3] sm:$0xff]  ;;  %v291_v5 = vld [vmem:[%s1630_s3 + $0x8] sm:$0xff]  ;;  %v293_v8 = vld [vmem:[%s1630_s3 + $0x18] sm:$0xff] }
   0x3   :  { %v1115_v6 = vpack.c.bf16 %v291_v5, %v290_v4  ;;  %v36_v9 = vld [vmem:[%s1629_s0 + $0x10] sm:$0xff]  ;;  %v1119_v10 = vpack.c.bf16 %v293_v8, %v292_v7  ;;  %v294_v11 = vld [vmem:[%s1630_s3 + $0x20] sm:$0xff]  ;;  %v295_v12 = vld [vmem:[%s1630_s3 + $0x28] sm:$0xff] }
   0x4   :  { %v1123_v13 = vpack.c.bf16 %v295_v12, %v294_v11  ;;  %v37_v14 = vld [vmem:[%s1629_s0 + $0x18] sm:$0xff]  ;;  %v296_v15 = vld [vmem:[%s1630_s3 + $0x30] sm:$0xff]  ;;  %v38_v18 = vld [vmem:[%s1629_s0 + $0x20] sm:$0xff] }
   0x5   :  { %1116 = vmatprep.subr.bf16.mxu0 %v1115_v6  ;;  %v297_v16 = vld [vmem:[%s1630_s3 + $0x38] sm:$0xff]  ;;  %v298_v19 = vld [vmem:[%s1630_s3 + $0x40] sm:$0xff]  ;;  %v299_v20 = vld [vmem:[%s1630_s3 + $0x48] sm:$0xff] }
   0x6   :  { %1232 = vset.pattern.permute.xlu1 %v1235_v3  ;;  %1230 = vset.pattern.permute.xlu0 %v1235_v3  ;;  %v1127_v17 = vpack.c.bf16 %v297_v16, %v296_v15  ;;  %v1131_v21 = vpack.c.bf16 %v299_v20, %v298_v19  ;;  %v39_v22 = vld [vmem:[%s1629_s0 + $0x28] sm:$0xff]  ;;  %v300_v23 = vld [vmem:[%s1630_s3 + $0x50] sm:$0xff]  ;;  %v301_v24 = vld [vmem:[%s1630_s3 + $0x58] sm:$0xff] }
   0x7   :  { %156 = vperm.xlu1 %1232, %v35_v1   ;;  %152 = vperm.xlu0 %1230, %v34_v2   ;;  %v1135_v25 = vpack.c.bf16 %v301_v24, %v300_v23  ;;  %v40_v26 = vld [vmem:[%s1629_s0 + $0x30] sm:$0xff]  ;;  %v302_v27 = vld [vmem:[%s1630_s3 + $0x60] sm:$0xff]  ;;  %v303_v28 = vld [vmem:[%s1630_s3 + $0x68] sm:$0xff] }
   0x8   :  { %1118 = vmatpush3.bf16.msra.mxu0 %v1115_v6  ;;  %v1139_v29 = vpack.c.bf16 %v303_v28, %v302_v27  ;;  %v41_v30 = vld [vmem:[%s1629_s0 + $0x38] sm:$0xff]  ;;  %v304_v31 = vld [vmem:[%s1630_s3 + $0x70] sm:$0xff]  ;;  %v42_v34 = vld [vmem:[%s1629_s0 + $0x40] sm:$0xff] }
   0x9   :  { %1120 = vmatprep.subr.bf16.mxu0 %v1119_v10  ;;  %v305_v32 = vld [vmem:[%s1630_s3 + $0x78] sm:$0xff]  ;;  %v43_v35 = vld [vmem:[%s1629_s0 + $0x48] sm:$0xff]  ;;  %v44_v36 = vld [vmem:[%s1629_s0 + $0x50] sm:$0xff] }
   0xa   :  { %v1143_v33 = vpack.c.bf16 %v305_v32, %v304_v31  ;;  %v45_v37 = vld [vmem:[%s1629_s0 + $0x58] sm:$0xff]  ;;  %v46_v38 = vld [vmem:[%s1629_s0 + $0x60] sm:$0xff]  ;;  %v47_v39 = vld [vmem:[%s1629_s0 + $0x68] sm:$0xff] }
   0xb   :  { %1233 = vset.pattern.permute.xlu1 %v1234_v0  ;;  %160 = vperm.xlu0 %1230, %v36_v9   ;;  %v48_v40 = vld [vmem:[%s1629_s0 + $0x70] sm:$0xff]  ;;  %v49_v41 = vld [vmem:[%s1629_s0 + $0x78] sm:$0xff]  ;;  %v474_v42 = vld [vmem:[%s1631_s5] sm:$0xff]  ;;  %v132_v0 = vshrl.u32 %v131_v63, 7 }
   0xc   :  { %63 = vperm.xlu1 %1233, %v36_v9   ;;  %1122 = vmatpush3.bf16.msra.mxu0 %v1119_v10  ;;  %v475_v43 = vld [vmem:[%s1631_s5 + $0x8] sm:$0xff]  ;;  %v476_v44 = vld [vmem:[%s1631_s5 + $0x10] sm:$0xff]  ;;  %v477_v46 = vld [vmem:[%s1631_s5 + $0x18] sm:$0xff] }
   0xd   :  { %1124 = vmatprep.subr.bf16.mxu0 %v1123_v13  ;;  %v1147_v45 = vpack.c.bf16 %v475_v43, %v474_v42  ;;  %v1151_v47 = vpack.c.bf16 %v477_v46, %v476_v44  ;;  %v478_v48 = vld [vmem:[%s1631_s5 + $0x20] sm:$0xff]  ;;  %v479_v49 = vld [vmem:[%s1631_s5 + $0x28] sm:$0xff]  ;;  %v480_v51 = vld [vmem:[%s1631_s5 + $0x30] sm:$0xff]  ;;  %v133_v1 = vsub.s32 0, %v132_v0  ;;  %v217_v2 = vsub.s32 1, %v132_v0 }
   0xe   :  { %v1155_v50 = vpack.c.bf16 %v479_v49, %v478_v48  ;;  %v481_v52 = vld [vmem:[%s1631_s5 + $0x38] sm:$0xff]  ;;  %v482_v54 = vld [vmem:[%s1631_s5 + $0x40] sm:$0xff]  ;;  %v483_v55 = vld [vmem:[%s1631_s5 + $0x48] sm:$0xff] }
   0xf   :  { %164 = vperm.xlu0 %1230, %v37_v14   ;;  %1148 = vmatprep.subr.bf16.mxu1 %v1147_v45  ;;  %v1159_v53 = vpack.c.bf16 %v481_v52, %v480_v51  ;;  %v1163_v56 = vpack.c.bf16 %v483_v55, %v482_v54  ;;  %v484_v57 = vld [vmem:[%s1631_s5 + $0x50] sm:$0xff]  ;;  %v485_v58 = vld [vmem:[%s1631_s5 + $0x58] sm:$0xff]  ;;  %v486_v60 = vld [vmem:[%s1631_s5 + $0x60] sm:$0xff] }
  0x10   :  { %68 = vperm.xlu1 %1233, %v37_v14   ;;  %1126 = vmatpush3.bf16.msra.mxu0 %v1123_v13  ;;  %v1167_v59 = vpack.c.bf16 %v485_v58, %v484_v57  ;;  %v487_v61 = vld [vmem:[%s1631_s5 + $0x68] sm:$0xff]  ;;  %v50_v3 = vld [vmem:[%s1632_s1] sm:$0x3] }
  0x11   :  { %1128 = vmatprep.subr.bf16.mxu0 %v1127_v17  ;;  %1150 = vmatpush3.bf16.msra.mxu1 %v1147_v45  ;;  %v1171_v62 = vpack.c.bf16 %v487_v61, %v486_v60  ;;  %v1427_v6 = vrot.slane %v50_v3, %v133_v1  ;;  %v1429_v7 = vrot.slane %v50_v3, %v217_v2  ;;  %v1438_v14 = vld [vmem:[%s1633_s2] ss:$0 sm:$0xff] }
  0x12   :  { %1152 = vmatprep.subr.bf16.mxu1 %v1151_v47 }
  0x13   :  { %168 = vperm.xlu0 %1230, %v38_v18  }
  0x14   :  { %73 = vperm.xlu1 %1233, %v38_v18   ;;  %1130 = vmatpush3.bf16.msra.mxu0 %v1127_v17 }
  0x15   :  { %1132 = vmatprep.subr.bf16.mxu0 %v1131_v21  ;;  %1154 = vmatpush3.bf16.msra.mxu1 %v1151_v47 }
  0x16   :  { %1156 = vmatprep.subr.bf16.mxu1 %v1155_v50 }
  0x17   :  { %172 = vperm.xlu0 %1230, %v39_v22  }
  0x18   :  { %78 = vperm.xlu1 %1233, %v39_v22   ;;  %1134 = vmatpush3.bf16.msra.mxu0 %v1131_v21 }
  0x19   :  { %1136 = vmatprep.subr.bf16.mxu0 %v1135_v25  ;;  %1158 = vmatpush3.bf16.msra.mxu1 %v1155_v50 }
  0x1a   :  { %1160 = vmatprep.subr.bf16.mxu1 %v1159_v53 }
  0x1b   :  { %176 = vperm.xlu0 %1230, %v40_v26  }
  0x1c   :  { %83 = vperm.xlu1 %1233, %v40_v26   ;;  %1138 = vmatpush3.bf16.msra.mxu0 %v1135_v25 }
  0x1d   :  { %1140 = vmatprep.subr.bf16.mxu0 %v1139_v29  ;;  %1162 = vmatpush3.bf16.msra.mxu1 %v1159_v53 }
  0x1e   :  { %1164 = vmatprep.subr.bf16.mxu1 %v1163_v56 }
  0x1f   :  { %180 = vperm.xlu0 %1230, %v41_v30  }
  0x20   :  { %88 = vperm.xlu1 %1233, %v41_v30   ;;  %1142 = vmatpush3.bf16.msra.mxu0 %v1139_v29 }
  0x21   :  { %1144 = vmatprep.subr.bf16.mxu0 %v1143_v33  ;;  %1166 = vmatpush3.bf16.msra.mxu1 %v1163_v56 }
  0x22   :  { %1168 = vmatprep.subr.bf16.mxu1 %v1167_v59 }
  0x23   :  { %184 = vperm.xlu0 %1230, %v42_v34  }
  0x24   :  { %93 = vperm.xlu1 %1233, %v42_v34   ;;  %1146 = vmatpush3.bf16.msra.mxu0 %v1143_v33 }
  0x25   :  { %1170 = vmatpush3.bf16.msra.mxu1 %v1167_v59 }
  0x26   :  { %1172 = vmatprep.subr.bf16.mxu1 %v1171_v62 }
  0x27   :  { %188 = vperm.xlu0 %1230, %v43_v35  }
  0x28   :  { %98 = vperm.xlu1 %1233, %v43_v35  }
  0x29   :  { %1174 = vmatpush3.bf16.msra.mxu1 %v1171_v62 }
  0x2b   :  { %192 = vperm.xlu0 %1230, %v44_v36  }
  0x2c   :  { %103 = vperm.xlu1 %1233, %v44_v36  }
  0x2f   :  { %196 = vperm.xlu0 %1230, %v45_v37  }
  0x30   :  { %108 = vperm.xlu1 %1233, %v45_v37  }
  0x33   :  { %200 = vperm.xlu0 %1230, %v46_v38  }
  0x34   :  { %113 = vperm.xlu1 %1233, %v46_v38  }
  0x37   :  { %204 = vperm.xlu0 %1230, %v47_v39  }
  0x38   :  { %118 = vperm.xlu1 %1233, %v47_v39  }
  0x3b   :  { %208 = vperm.xlu0 %1230, %v48_v40  }
  0x3c   :  { %123 = vperm.xlu1 %1233, %v48_v40  }
  0x3f   :  { %212 = vperm.xlu0 %1230, %v49_v41  }
  0x40   :  { %128 = vperm.xlu1 %1233, %v49_v41  }
  0x81   :  { %v59_v4 = vpop.permute.xlu1 %58  ;;  %v54_v5 = vpop.permute.xlu0 %53 }
  0x82   :  { %v136_v10 = vmul.f32 %v1427_v6, %v59_v4  ;;  %v135_v11 = vmul.f32 %v1427_v6, %v54_v5 }
  0x86   :  { %v157_v8 = vpop.permute.xlu1 %156  ;;  %v153_v9 = vpop.permute.xlu0 %152 }
  0x87   :  { %v220_v12 = vmul.f32 %v1429_v7, %v157_v8  ;;  %v219_v13 = vmul.f32 %v1429_v7, %v153_v9 }
  0x89   :  { %v236_v15 = vadd.f32 %v220_v12, %v136_v10  ;;  %v235_v16 = vadd.f32 %v219_v13, %v135_v11 }
  0x8a   :  { %v161_v17 = vpop.permute.xlu0 %160 }
  0x8b   :  { %v221_v18 = vmul.f32 %v1429_v7, %v161_v17  ;;  %v64_v19 = vpop.permute.xlu1 %63  ;;  %v258_v20 = vadd.f32 %v1438_v14, %v235_v16  ;;  %v259_v21 = vadd.f32 %v1438_v14, %v236_v15 }
  0x8c   :  { %v137_v22 = vmul.f32 %v1427_v6, %v64_v19 }
  0x8d   :  { %v274_v23 = vmax.f32 %v258_v20, 0.0  ;;  %v275_v24 = vmax.f32 %v259_v21, 0.0 }
  0x8e   :  { %v237_v25 = vadd.f32 %v221_v18, %v137_v22  ;;  %v165_v26 = vpop.permute.xlu0 %164 }
  0x8f   :  { %v222_v27 = vmul.f32 %v1429_v7, %v165_v26  ;;  %v69_v28 = vpop.permute.xlu1 %68  ;;  %979 = vmatprep.mubr.f32.mxu0 %v274_v23 }
  0x90   :  { %v138_v29 = vmul.f32 %v1427_v6, %v69_v28  ;;  %980 = vmatmul.mubr.f32.vlgmr.msra.gmra.mrb[0].mxu0 %v275_v24  ;;  %v260_v30 = vadd.f32 %v1438_v14, %v237_v25 }
  0x92   :  { %v238_v31 = vadd.f32 %v222_v27, %v138_v29  ;;  %v169_v32 = vpop.permute.xlu0 %168  ;;  %v276_v33 = vmax.f32 %v260_v30, 0.0 }
  0x93   :  { %v223_v34 = vmul.f32 %v1429_v7, %v169_v32  ;;  %v74_v35 = vpop.permute.xlu1 %73 }
  0x94   :  { %v139_v36 = vmul.f32 %v1427_v6, %v74_v35  ;;  %982 = vmatprep.mubr.f32.mxu0 %v276_v33  ;;  %v261_v37 = vadd.f32 %v1438_v14, %v238_v31 }
  0x96   :  { %v239_v38 = vadd.f32 %v223_v34, %v139_v36  ;;  %v173_v39 = vpop.permute.xlu0 %172  ;;  %v277_v40 = vmax.f32 %v261_v37, 0.0 }
  0x97   :  { %v224_v41 = vmul.f32 %v1429_v7, %v173_v39  ;;  %v79_v42 = vpop.permute.xlu1 %78 }
  0x98   :  { %v140_v43 = vmul.f32 %v1427_v6, %v79_v42  ;;  %983 = vmatmul.mubr.f32.gmra.mrb[2].mxu0 %v277_v40  ;;  %v262_v44 = vadd.f32 %v1438_v14, %v239_v38 }
  0x9a   :  { %v240_v45 = vadd.f32 %v224_v41, %v140_v43  ;;  %v177_v46 = vpop.permute.xlu0 %176  ;;  %v278_v47 = vmax.f32 %v262_v44, 0.0 }
  0x9b   :  { %v225_v48 = vmul.f32 %v1429_v7, %v177_v46  ;;  %v84_v49 = vpop.permute.xlu1 %83 }
  0x9c   :  { %v141_v50 = vmul.f32 %v1427_v6, %v84_v49  ;;  %985 = vmatprep.mubr.f32.mxu0 %v278_v47  ;;  %v263_v51 = vadd.f32 %v1438_v14, %v240_v45 }
  0x9e   :  { %v241_v52 = vadd.f32 %v225_v48, %v141_v50  ;;  %v181_v53 = vpop.permute.xlu0 %180  ;;  %v279_v54 = vmax.f32 %v263_v51, 0.0 }
  0x9f   :  { %v226_v55 = vmul.f32 %v1429_v7, %v181_v53  ;;  %v89_v56 = vpop.permute.xlu1 %88 }
  0xa0   :  { %v142_v57 = vmul.f32 %v1427_v6, %v89_v56  ;;  %986 = vmatmul.mubr.f32.gmra.mrb[4].mxu0 %v279_v54  ;;  %v264_v58 = vadd.f32 %v1438_v14, %v241_v52 }
  0xa2   :  { %v242_v59 = vadd.f32 %v226_v55, %v142_v57  ;;  %v185_v60 = vpop.permute.xlu0 %184  ;;  %v280_v61 = vmax.f32 %v264_v58, 0.0  ;;  %v488_v58 = vld [vmem:[%s1631_s5 + $0x70] sm:$0xff] }
  0xa3   :  { %v227_v62 = vmul.f32 %v1429_v7, %v185_v60  ;;  %v94_v63 = vpop.permute.xlu1 %93  ;;  %v660_v60 = vld [vmem:[%s1634_s7 + $0x10] sm:$0xff] }
  0xa4   :  { %v143_v0 = vmul.f32 %v1427_v6, %v94_v63  ;;  %988 = vmatprep.mubr.f32.mxu0 %v280_v61  ;;  %v265_v1 = vadd.f32 %v1438_v14, %v242_v59 }
  0xa6   :  { %v243_v2 = vadd.f32 %v227_v62, %v143_v0  ;;  %v189_v3 = vpop.permute.xlu0 %188  ;;  %v281_v4 = vmax.f32 %v265_v1, 0.0  ;;  %v661_v62 = vld [vmem:[%s1634_s7 + $0x18] sm:$0xff]  ;;  %v662_v0 = vld [vmem:[%s1634_s7 + $0x20] sm:$0xff]  ;;  %v663_v1 = vld [vmem:[%s1634_s7 + $0x28] sm:$0xff] }
  0xa7   :  { %v228_v5 = vmul.f32 %v1429_v7, %v189_v3  ;;  %v99_v8 = vpop.permute.xlu1 %98  ;;  %v1183_v63 = vpack.c.bf16 %v661_v62, %v660_v60  ;;  %v664_v3 = vld [vmem:[%s1634_s7 + $0x30] sm:$0xff] }
  0xa8   :  { %v144_v9 = vmul.f32 %v1427_v6, %v99_v8  ;;  %989 = vmatmul.mubr.f32.gmra.mrb[6].mxu0 %v281_v4  ;;  %v266_v10 = vadd.f32 %v1438_v14, %v243_v2  ;;  %v1187_v2 = vpack.c.bf16 %v663_v1, %v662_v0  ;;  %v665_v4 = vld [vmem:[%s1634_s7 + $0x38] sm:$0xff]  ;;  %v666_v8 = vld [vmem:[%s1634_s7 + $0x40] sm:$0xff]  ;;  %v672_v0 = vld [vmem:[%s1634_s7 + $0x70] sm:$0xff] }
  0xa9   :  { %v673_v1 = vld [vmem:[%s1634_s7 + $0x78] sm:$0xff] }
  0xaa   :  { %v244_v11 = vadd.f32 %v228_v5, %v144_v9  ;;  %v193_v12 = vpop.permute.xlu0 %192  ;;  %v282_v13 = vmax.f32 %v266_v10, 0.0  ;;  %v1191_v5 = vpack.c.bf16 %v665_v4, %v664_v3  ;;  %v667_v9 = vld [vmem:[%s1634_s7 + $0x48] sm:$0xff]  ;;  %v14_v3 = vstv %s1636_s8  ;;  %v849_v4 = vld [vmem:[%s1637_s6] ss:$0 sm:$0xff] }
  0xab   :  { %v229_v15 = vmul.f32 %v1429_v7, %v193_v12  ;;  %v104_v16 = vpop.permute.xlu1 %103  ;;  %v1195_v10 = vpack.c.bf16 %v667_v9, %v666_v8  ;;  %v669_v12 = vld [vmem:[%s1634_s7 + $0x58] sm:$0xff]  ;;  %15 = vst [vmem:[#allocation2] sm:$0x1] %v14_v3 }
  0xac   :  { %v145_v17 = vmul.f32 %v1427_v6, %v104_v16  ;;  %991 = vmatprep.mubr.f32.mxu0 %v282_v13  ;;  %v267_v18 = vadd.f32 %v1438_v14, %v244_v11  ;;  %v668_v11 = vld [vmem:[%s1634_s7 + $0x50] sm:$0xff]  ;;  %v671_v16 = vld [vmem:[%s1634_s7 + $0x68] sm:$0xff] }
  0xad   :  { %v1199_v13 = vpack.c.bf16 %v669_v12, %v668_v11 }
  0xae   :  { %v245_v19 = vadd.f32 %v229_v15, %v145_v17  ;;  %v197_v20 = vpop.permute.xlu0 %196  ;;  %v283_v21 = vmax.f32 %v267_v18, 0.0  ;;  %v670_v15 = vld [vmem:[%s1634_s7 + $0x60] sm:$0xff] }
  0xaf   :  { %v230_v22 = vmul.f32 %v1429_v7, %v197_v20  ;;  %v109_v23 = vpop.permute.xlu1 %108  ;;  %v1203_v17 = vpack.c.bf16 %v671_v16, %v670_v15  ;;  %v1535_v18 = vld [vmem:[%s1635_s4] ss:$0 sm:$0xff] }
  0xb0   :  { %v146_v24 = vmul.f32 %v1427_v6, %v109_v23  ;;  %992 = vmatmul.mubr.f32.gmra.mrb[8].mxu0 %v283_v21  ;;  %v268_v25 = vadd.f32 %v1438_v14, %v245_v19 }
  0xb2   :  { %v246_v26 = vadd.f32 %v230_v22, %v146_v24  ;;  %v201_v27 = vpop.permute.xlu0 %200  ;;  %v284_v28 = vmax.f32 %v268_v25, 0.0 }
  0xb3   :  { %v231_v29 = vmul.f32 %v1429_v7, %v201_v27  ;;  %v114_v30 = vpop.permute.xlu1 %113 }
  0xb4   :  { %v147_v31 = vmul.f32 %v1427_v6, %v114_v30  ;;  %994 = vmatprep.mubr.f32.mxu0 %v284_v28  ;;  %v269_v32 = vadd.f32 %v1438_v14, %v246_v26 }
  0xb6   :  { %v247_v33 = vadd.f32 %v231_v29, %v147_v31  ;;  %v205_v34 = vpop.permute.xlu0 %204  ;;  %v285_v35 = vmax.f32 %v269_v32, 0.0 }
  0xb7   :  { %v232_v36 = vmul.f32 %v1429_v7, %v205_v34  ;;  %v119_v37 = vpop.permute.xlu1 %118 }
  0xb8   :  { %v148_v38 = vmul.f32 %v1427_v6, %v119_v37  ;;  %995 = vmatmul.mubr.f32.gmra.mrb[10].mxu0 %v285_v35  ;;  %v270_v39 = vadd.f32 %v1438_v14, %v247_v33 }
  0xba   :  { %v248_v40 = vadd.f32 %v232_v36, %v148_v38  ;;  %v209_v41 = vpop.permute.xlu0 %208  ;;  %v286_v42 = vmax.f32 %v270_v39, 0.0 }
  0xbb   :  { %v233_v43 = vmul.f32 %v1429_v7, %v209_v41  ;;  %v124_v44 = vpop.permute.xlu1 %123 }
  0xbc   :  { %v149_v45 = vmul.f32 %v1427_v6, %v124_v44  ;;  %997 = vmatprep.mubr.f32.mxu0 %v286_v42  ;;  %v271_v46 = vadd.f32 %v1438_v14, %v248_v40 }
  0xbe   :  { %v249_v47 = vadd.f32 %v233_v43, %v149_v45  ;;  %v213_v48 = vpop.permute.xlu0 %212  ;;  %v287_v49 = vmax.f32 %v271_v46, 0.0 }
  0xbf   :  { %v234_v50 = vmul.f32 %v1429_v7, %v213_v48  ;;  %v129_v51 = vpop.permute.xlu1 %128  ;;  %v489_v7 = vld [vmem:[%s1631_s5 + $0x78] sm:$0xff] }
  0xc0   :  { %v150_v52 = vmul.f32 %v1427_v6, %v129_v51  ;;  %998 = vmatmul.mubr.f32.gmra.mrb[12].mxu0 %v287_v49  ;;  %v272_v53 = vadd.f32 %v1438_v14, %v249_v47  ;;  %v1175_v59 = vpack.c.bf16 %v489_v7, %v488_v58  ;;  %v658_v6 = vld [vmem:[%s1634_s7] sm:$0xff] }
  0xc2   :  { %v250_v54 = vadd.f32 %v234_v50, %v150_v52  ;;  %v288_v55 = vmax.f32 %v272_v53, 0.0  ;;  %1176 = vmatprep.subr.bf16.mxu1 %v1175_v59 }
  0xc3   :  { %1178 = vmatpush3.bf16.msra.mxu1 %v1175_v59 }
  0xc4   :  { %1000 = vmatprep.mubr.f32.mxu0 %v288_v55  ;;  %v273_v56 = vadd.f32 %v1438_v14, %v250_v54  ;;  %v659_v14 = vld [vmem:[%s1634_s7 + $0x8] sm:$0xff] }
  0xc5   :  { %v1179_v61 = vpack.c.bf16 %v659_v14, %v658_v6 }
  0xc6   :  { %v289_v57 = vmax.f32 %v273_v56, 0.0 }
  0xc7   :  { %1180 = vmatprep.subr.bf16.mxu0 %v1179_v61  ;;  %1211 = vmatprep.subr.bf16.mxu1 %v1179_v61 }
  0xc8   :  { %1001 = vmatmul.mubr.f32.gmra.mrb[14].mxu0 %v289_v57 }
  0xc9   :  { %1182 = vmatpush3.bf16.msra.mxu0 %v1179_v61 }
  0xca   :  { %1184 = vmatprep.subr.bf16.mxu0 %v1183_v63 }
  0xcd   :  { %1186 = vmatpush3.bf16.msra.mxu0 %v1183_v63 }
  0xce   :  { %1188 = vmatprep.subr.bf16.mxu0 %v1187_v2 }
  0xd1   :  { %1190 = vmatpush3.bf16.msra.mxu0 %v1187_v2 }
  0xd2   :  { %1192 = vmatprep.subr.bf16.mxu0 %v1191_v5 }
  0xd5   :  { %1194 = vmatpush3.bf16.msra.mxu0 %v1191_v5 }
  0xd6   :  { %1196 = vmatprep.subr.bf16.mxu0 %v1195_v10 }
  0xd9   :  { %1198 = vmatpush3.bf16.msra.mxu0 %v1195_v10 }
  0xda   :  { %1200 = vmatprep.subr.bf16.mxu0 %v1199_v13 }
  0xdd   :  { %1202 = vmatpush3.bf16.msra.mxu0 %v1199_v13 }
  0xde   :  { %1204 = vmatprep.subr.bf16.mxu0 %v1203_v17 }
  0xe1   :  { %1206 = vmatpush3.bf16.msra.mxu0 %v1203_v17 }
 0x163   :  { %v981_v19 = vpop.f32.mrb[0].mxu0 }
 0x164   :  { %v385_v20 = vadd.f32 %v981_v19, %v1535_v18  ;;  %v379_v21 = vpop.f32.mrb[1].mxu0 }
 0x165   :  { %v380_v22 = vadd.f32 %v1535_v18, %v379_v21 }
 0x166   :  { %v459_v24 = vmax.f32 %v385_v20, 0.0 }
 0x167   :  { %v458_v23 = vmax.f32 %v380_v22, 0.0 }
 0x169   :  { %1035 = vmatprep.mubr.f32.mxu1 %v458_v23 }
 0x16a   :  { %1036 = vmatmul.mubr.f32.vlgmr.msra.gmra.mrb[0].mxu1 %v459_v24 }
 0x16b   :  { %v984_v25 = vpop.f32.mrb[2].mxu0  ;;  %1219 = vmatpush3.bf16.msra.mxu1 %v1179_v61 }
 0x16c   :  { %v395_v26 = vadd.f32 %v984_v25, %v1535_v18  ;;  %v389_v27 = vpop.f32.mrb[3].mxu0  ;;  %1212 = vmatprep.subr.bf16.mxu1 %v1183_v63 }
 0x16d   :  { %v390_v28 = vadd.f32 %v1535_v18, %v389_v27 }
 0x16e   :  { %v461_v30 = vmax.f32 %v395_v26, 0.0 }
 0x16f   :  { %v460_v29 = vmax.f32 %v390_v28, 0.0  ;;  %1220 = vmatpush3.bf16.msra.mxu1 %v1183_v63 }
 0x170   :  { %1213 = vmatprep.subr.bf16.mxu1 %v1187_v2 }
 0x171   :  { %1038 = vmatprep.mubr.f32.mxu1 %v460_v29 }
 0x172   :  { %1039 = vmatmul.mubr.f32.gmra.mrb[2].mxu1 %v461_v30 }
 0x173   :  { %v987_v31 = vpop.f32.mrb[4].mxu0  ;;  %1221 = vmatpush3.bf16.msra.mxu1 %v1187_v2  ;;  %v1207_v2 = vpack.c.bf16 %v673_v1, %v672_v0 }
 0x174   :  { %v405_v32 = vadd.f32 %v987_v31, %v1535_v18  ;;  %v399_v33 = vpop.f32.mrb[5].mxu0  ;;  %1214 = vmatprep.subr.bf16.mxu1 %v1191_v5 }
 0x175   :  { %v400_v34 = vadd.f32 %v1535_v18, %v399_v33  ;;  %1208 = vmatprep.subr.bf16.mxu0 %v1207_v2 }
 0x176   :  { %v463_v36 = vmax.f32 %v405_v32, 0.0  ;;  %1210 = vmatpush3.bf16.msra.mxu0 %v1207_v2 }
 0x177   :  { %v462_v35 = vmax.f32 %v400_v34, 0.0  ;;  %1222 = vmatpush3.bf16.msra.mxu1 %v1191_v5 }
 0x178   :  { %1215 = vmatprep.subr.bf16.mxu1 %v1195_v10 }
 0x179   :  { %1041 = vmatprep.mubr.f32.mxu1 %v462_v35 }
 0x17a   :  { %1042 = vmatmul.mubr.f32.gmra.mrb[4].mxu1 %v463_v36 }
 0x17b   :  { %v990_v37 = vpop.f32.mrb[6].mxu0  ;;  %1223 = vmatpush3.bf16.msra.mxu1 %v1195_v10 }
 0x17c   :  { %v415_v38 = vadd.f32 %v990_v37, %v1535_v18  ;;  %v409_v39 = vpop.f32.mrb[7].mxu0  ;;  %1216 = vmatprep.subr.bf16.mxu1 %v1199_v13 }
 0x17d   :  { %v410_v40 = vadd.f32 %v1535_v18, %v409_v39 }
 0x17e   :  { %v465_v42 = vmax.f32 %v415_v38, 0.0 }
 0x17f   :  { %v464_v41 = vmax.f32 %v410_v40, 0.0  ;;  %1224 = vmatpush3.bf16.msra.mxu1 %v1199_v13 }
 0x180   :  { %1217 = vmatprep.subr.bf16.mxu1 %v1203_v17 }
 0x181   :  { %1044 = vmatprep.mubr.f32.mxu1 %v464_v41 }
 0x182   :  { %1045 = vmatmul.mubr.f32.gmra.mrb[6].mxu1 %v465_v42 }
 0x183   :  { %v993_v43 = vpop.f32.mrb[8].mxu0  ;;  %1225 = vmatpush3.bf16.msra.mxu1 %v1203_v17 }
 0x184   :  { %v425_v44 = vadd.f32 %v993_v43, %v1535_v18  ;;  %v419_v45 = vpop.f32.mrb[9].mxu0  ;;  %1218 = vmatprep.subr.bf16.mxu1 %v1207_v2 }
 0x185   :  { %v420_v46 = vadd.f32 %v1535_v18, %v419_v45 }
 0x186   :  { %v467_v48 = vmax.f32 %v425_v44, 0.0 }
 0x187   :  { %v466_v47 = vmax.f32 %v420_v46, 0.0  ;;  %1226 = vmatpush3.bf16.msra.mxu1 %v1207_v2 }
 0x189   :  { %1047 = vmatprep.mubr.f32.mxu1 %v466_v47 }
 0x18a   :  { %1048 = vmatmul.mubr.f32.gmra.mrb[8].mxu1 %v467_v48 }
 0x18b   :  { %v996_v49 = vpop.f32.mrb[10].mxu0 }
 0x18c   :  { %v435_v50 = vadd.f32 %v996_v49, %v1535_v18  ;;  %v429_v51 = vpop.f32.mrb[11].mxu0 }
 0x18d   :  { %v430_v52 = vadd.f32 %v1535_v18, %v429_v51 }
 0x18e   :  { %v469_v54 = vmax.f32 %v435_v50, 0.0 }
 0x18f   :  { %v468_v53 = vmax.f32 %v430_v52, 0.0 }
 0x191   :  { %1050 = vmatprep.mubr.f32.mxu1 %v468_v53 }
 0x192   :  { %1051 = vmatmul.mubr.f32.gmra.mrb[10].mxu1 %v469_v54 }
 0x193   :  { %v999_v55 = vpop.f32.mrb[12].mxu0 }
 0x194   :  { %v445_v56 = vadd.f32 %v999_v55, %v1535_v18  ;;  %v439_v57 = vpop.f32.mrb[13].mxu0 }
 0x195   :  { %v440_v58 = vadd.f32 %v1535_v18, %v439_v57 }
 0x196   :  { %v471_v59 = vmax.f32 %v445_v56, 0.0  ;;  %v850_v56 = vld [vmem:[#allocation2] ss:$0 sm:$0xff] }
 0x197   :  { %v470_v7 = vmax.f32 %v440_v58, 0.0 }
 0x199   :  { %1053 = vmatprep.mubr.f32.mxu1 %v470_v7 }
 0x19a   :  { %1054 = vmatmul.mubr.f32.gmra.mrb[12].mxu1 %v471_v59 }
 0x19b   :  { %v1002_v6 = vpop.f32.mrb[14].mxu0 }
 0x19c   :  { %v455_v14 = vadd.f32 %v1002_v6, %v1535_v18  ;;  %v449_v60 = vpop.f32.mrb[15].mxu0 }
 0x19d   :  { %v450_v61 = vadd.f32 %v1535_v18, %v449_v60 }
 0x19e   :  { %v473_v63 = vmax.f32 %v455_v14, 0.0 }
 0x19f   :  { %v472_v62 = vmax.f32 %v450_v61, 0.0 }
 0x1a1   :  { %1056 = vmatprep.mubr.f32.mxu1 %v472_v62 }
 0x1a2   :  { %1057 = vmatmul.mubr.f32.gmra.mrb[14].mxu1 %v473_v63 }
 0x23d   :  { %v1037_v5 = vpop.f32.mrb[0].mxu1 }
 0x23e   :  { %v569_v8 = vadd.f32 %v1037_v5, %v849_v4  ;;  %v563_v9 = vpop.f32.mrb[1].mxu1 }
 0x23f   :  { %v564_v10 = vadd.f32 %v849_v4, %v563_v9 }
 0x240   :  { %v643_v12 = vmax.f32 %v569_v8, 0.0 }
 0x241   :  { %v642_v11 = vmax.f32 %v564_v10, 0.0 }
 0x243   :  { %1091 = vmatprep.mubr.f32.mxu0 %v642_v11 }
 0x244   :  { %1092 = vmatmul.mubr.f32.vlgmr.msra.gmra.mrb[16].mxu0 %v643_v12 }
 0x245   :  { %v1040_v13 = vpop.f32.mrb[2].mxu1 }
 0x246   :  { %v579_v15 = vadd.f32 %v1040_v13, %v849_v4  ;;  %v573_v16 = vpop.f32.mrb[3].mxu1 }
 0x247   :  { %v574_v17 = vadd.f32 %v849_v4, %v573_v16 }
 0x248   :  { %v645_v19 = vmax.f32 %v579_v15, 0.0 }
 0x249   :  { %v644_v18 = vmax.f32 %v574_v17, 0.0 }
 0x24b   :  { %1094 = vmatprep.mubr.f32.mxu0 %v644_v18 }
 0x24c   :  { %1095 = vmatmul.mubr.f32.gmra.mrb[18].mxu0 %v645_v19 }
 0x24d   :  { %v1043_v20 = vpop.f32.mrb[4].mxu1 }
 0x24e   :  { %v589_v21 = vadd.f32 %v1043_v20, %v849_v4  ;;  %v583_v22 = vpop.f32.mrb[5].mxu1 }
 0x24f   :  { %v584_v23 = vadd.f32 %v849_v4, %v583_v22 }
 0x250   :  { %v647_v25 = vmax.f32 %v589_v21, 0.0 }
 0x251   :  { %v646_v24 = vmax.f32 %v584_v23, 0.0 }
 0x253   :  { %1097 = vmatprep.mubr.f32.mxu0 %v646_v24 }
 0x254   :  { %1098 = vmatmul.mubr.f32.gmra.mrb[20].mxu0 %v647_v25 }
 0x255   :  { %v1046_v26 = vpop.f32.mrb[6].mxu1 }
 0x256   :  { %v599_v27 = vadd.f32 %v1046_v26, %v849_v4  ;;  %v593_v28 = vpop.f32.mrb[7].mxu1 }
 0x257   :  { %v594_v29 = vadd.f32 %v849_v4, %v593_v28 }
 0x258   :  { %v649_v31 = vmax.f32 %v599_v27, 0.0 }
 0x259   :  { %v648_v30 = vmax.f32 %v594_v29, 0.0 }
 0x25b   :  { %1100 = vmatprep.mubr.f32.mxu0 %v648_v30 }
 0x25c   :  { %1101 = vmatmul.mubr.f32.gmra.mrb[22].mxu0 %v649_v31 }
 0x25d   :  { %v1049_v32 = vpop.f32.mrb[8].mxu1 }
 0x25e   :  { %v609_v33 = vadd.f32 %v1049_v32, %v849_v4  ;;  %v603_v34 = vpop.f32.mrb[9].mxu1 }
 0x25f   :  { %v604_v35 = vadd.f32 %v849_v4, %v603_v34 }
 0x260   :  { %v651_v37 = vmax.f32 %v609_v33, 0.0 }
 0x261   :  { %v650_v36 = vmax.f32 %v604_v35, 0.0 }
 0x263   :  { %1103 = vmatprep.mubr.f32.mxu1 %v650_v36 }
 0x264   :  { %1104 = vmatmul.mubr.f32.vlgmr.msra.gmra.mrb[16].mxu1 %v651_v37 }
 0x265   :  { %v1052_v38 = vpop.f32.mrb[10].mxu1 }
 0x266   :  { %v619_v39 = vadd.f32 %v1052_v38, %v849_v4  ;;  %v613_v40 = vpop.f32.mrb[11].mxu1 }
 0x267   :  { %v614_v41 = vadd.f32 %v849_v4, %v613_v40 }
 0x268   :  { %v653_v43 = vmax.f32 %v619_v39, 0.0 }
 0x269   :  { %v652_v42 = vmax.f32 %v614_v41, 0.0 }
 0x26b   :  { %1106 = vmatprep.mubr.f32.mxu1 %v652_v42 }
 0x26c   :  { %1107 = vmatmul.mubr.f32.gmra.mrb[18].mxu1 %v653_v43 }
 0x26d   :  { %v1055_v44 = vpop.f32.mrb[12].mxu1 }
 0x26e   :  { %v629_v45 = vadd.f32 %v1055_v44, %v849_v4  ;;  %v623_v46 = vpop.f32.mrb[13].mxu1 }
 0x26f   :  { %v624_v47 = vadd.f32 %v849_v4, %v623_v46 }
 0x270   :  { %v655_v49 = vmax.f32 %v629_v45, 0.0 }
 0x271   :  { %v654_v48 = vmax.f32 %v624_v47, 0.0 }
 0x273   :  { %1109 = vmatprep.mubr.f32.mxu1 %v654_v48 }
 0x274   :  { %1110 = vmatmul.mubr.f32.gmra.mrb[20].mxu1 %v655_v49 }
 0x275   :  { %v1058_v50 = vpop.f32.mrb[14].mxu1 }
 0x276   :  { %v639_v51 = vadd.f32 %v1058_v50, %v849_v4  ;;  %v633_v52 = vpop.f32.mrb[15].mxu1 }
 0x277   :  { %v634_v53 = vadd.f32 %v849_v4, %v633_v52 }
 0x278   :  { %v657_v55 = vmax.f32 %v639_v51, 0.0 }
 0x279   :  { %v656_v54 = vmax.f32 %v634_v53, 0.0 }
 0x27b   :  { %1112 = vmatprep.mubr.f32.mxu1 %v656_v54 }
 0x27c   :  { %1113 = vmatmul.mubr.f32.gmra.mrb[22].mxu1 %v657_v55 }
 0x317   :  { %v1093_v57 = vpop.f32.mrb[16].mxu0 }
 0x318   :  { %v753_v58 = vadd.f32 %v1093_v57, %v850_v56  ;;  %v747_v7 = vpop.f32.mrb[17].mxu0 }
 0x319   :  { %v748_v59 = vadd.f32 %v850_v56, %v747_v7 }
 0x31a   :  { %828 = vst.msk [vmem:[%s1638_s9 + $0x8] sm:$0xff] %vm826_vm0, %v753_v58 }
 0x31b   :  { %827 = vst.msk [vmem:[%s1638_s9] sm:$0xff] %vm826_vm0, %v748_v59 }
 0x31f   :  { %v1096_v6 = vpop.f32.mrb[18].mxu0 }
 0x320   :  { %v763_v14 = vadd.f32 %v1096_v6, %v850_v56  ;;  %v757_v60 = vpop.f32.mrb[19].mxu0 }
 0x321   :  { %v758_v61 = vadd.f32 %v850_v56, %v757_v60 }
 0x322   :  { %830 = vst.msk [vmem:[%s1638_s9 + $0x18] sm:$0xff] %vm826_vm0, %v763_v14 }
 0x323   :  { %829 = vst.msk [vmem:[%s1638_s9 + $0x10] sm:$0xff] %vm826_vm0, %v758_v61 }
 0x327   :  { %v1099_v62 = vpop.f32.mrb[20].mxu0 }
 0x328   :  { %v773_v63 = vadd.f32 %v1099_v62, %v850_v56  ;;  %v767_v0 = vpop.f32.mrb[21].mxu0 }
 0x329   :  { %v768_v1 = vadd.f32 %v850_v56, %v767_v0 }
 0x32a   :  { %832 = vst.msk [vmem:[%s1638_s9 + $0x28] sm:$0xff] %vm826_vm0, %v773_v63 }
 0x32b   :  { %831 = vst.msk [vmem:[%s1638_s9 + $0x20] sm:$0xff] %vm826_vm0, %v768_v1 }
 0x32f   :  { %v1102_v2 = vpop.f32.mrb[22].mxu0 }
 0x330   :  { %v783_v3 = vadd.f32 %v1102_v2, %v850_v56  ;;  %v777_v4 = vpop.f32.mrb[23].mxu0 }
 0x331   :  { %v778_v5 = vadd.f32 %v850_v56, %v777_v4 }
 0x332   :  { %834 = vst.msk [vmem:[%s1638_s9 + $0x38] sm:$0xff] %vm826_vm0, %v783_v3 }
 0x333   :  { %833 = vst.msk [vmem:[%s1638_s9 + $0x30] sm:$0xff] %vm826_vm0, %v778_v5 }
 0x337   :  { %v1105_v8 = vpop.f32.mrb[16].mxu1 }
 0x338   :  { %v793_v9 = vadd.f32 %v1105_v8, %v850_v56  ;;  %v787_v10 = vpop.f32.mrb[17].mxu1 }
 0x339   :  { %v788_v11 = vadd.f32 %v850_v56, %v787_v10 }
 0x33a   :  { %836 = vst.msk [vmem:[%s1638_s9 + $0x48] sm:$0xff] %vm826_vm0, %v793_v9 }
 0x33b   :  { %835 = vst.msk [vmem:[%s1638_s9 + $0x40] sm:$0xff] %vm826_vm0, %v788_v11 }
 0x33f   :  { %v1108_v12 = vpop.f32.mrb[18].mxu1 }
 0x340   :  { %v803_v13 = vadd.f32 %v1108_v12, %v850_v56  ;;  %v797_v15 = vpop.f32.mrb[19].mxu1 }
 0x341   :  { %v798_v16 = vadd.f32 %v850_v56, %v797_v15 }
 0x342   :  { %838 = vst.msk [vmem:[%s1638_s9 + $0x58] sm:$0xff] %vm826_vm0, %v803_v13 }
 0x343   :  { %837 = vst.msk [vmem:[%s1638_s9 + $0x50] sm:$0xff] %vm826_vm0, %v798_v16 }
 0x347   :  { %v1111_v17 = vpop.f32.mrb[20].mxu1 }
 0x348   :  { %v813_v18 = vadd.f32 %v1111_v17, %v850_v56  ;;  %v807_v19 = vpop.f32.mrb[21].mxu1 }
 0x349   :  { %v808_v20 = vadd.f32 %v850_v56, %v807_v19 }
 0x34a   :  { %840 = vst.msk [vmem:[%s1638_s9 + $0x68] sm:$0xff] %vm826_vm0, %v813_v18 }
 0x34b   :  { %839 = vst.msk [vmem:[%s1638_s9 + $0x60] sm:$0xff] %vm826_vm0, %v808_v20 }
 0x34f   :  { %v1114_v21 = vpop.f32.mrb[22].mxu1 }
 0x350   :  { %v823_v22 = vadd.f32 %v1114_v21, %v850_v56  ;;  %v817_v23 = vpop.f32.mrb[23].mxu1 }
 0x351   :  { %v818_v24 = vadd.f32 %v850_v56, %v817_v23 }
 0x352   :  { %842 = vst.msk [vmem:[%s1638_s9 + $0x78] sm:$0xff] %vm826_vm0, %v823_v22 }
 0x353   :  { %841 = vst.msk [vmem:[%s1638_s9 + $0x70] sm:$0xff] %vm826_vm0, %v818_v24 }

</bundles_post_ra>
